<compile_context>
chip_gen: v5e
topology: v5e:2x2
jax: 0.10.0
libtpu: 0.0.40
codegen_flags: <defaults>
</compile_context>

<pallas_src>
import functools

import jax
import jax.numpy as jnp
from jax import lax
from jax.experimental import pallas as pl
from jax.experimental.pallas import tpu as pltpu


_INV_SQRT2 = 0.7071067811865476


def _round_up(n, m):
    return ((n + m - 1) // m) * m


def _gelu(h, approximate):
    if approximate:
        # tanh form runs on the EUP (otherwise-idle bundle slot) — useful on
        # v5e when VALU-bound, but accuracy-visible; off by default.
        return jax.nn.gelu(h, approximate=True)
    # exact erf form — matches torch nn.GELU(approximate='none')
    return 0.5 * h * (1.0 + lax.erf(h * _INV_SQRT2))


# --------------------------------------------------------------------------- #
# Kernels
# --------------------------------------------------------------------------- #

def _mlp_kernel_resident(x_ref, w1_ref, b1_ref, w2_ref, b2_ref, o_ref, *,
                         approximate_gelu):
    """Full W1/W2 resident in VMEM; one row tile per grid step."""
    x = x_ref[...]
    # c_fc: (tm, D) @ (D, H) -> f32 (tm, H)
    h = jnp.dot(x, w1_ref[...], preferred_element_type=jnp.float32)
    h = h + b1_ref[...].astype(jnp.float32)
    h = _gelu(h, approximate_gelu)
    # c_proj: (tm, H) @ (H, D) -> f32 (tm, D)
    y = jnp.dot(h.astype(w2_ref.dtype), w2_ref[...],
                preferred_element_type=jnp.float32)
    y = y + b2_ref[...].astype(jnp.float32)
    # TODO(synk): dropout is identity here (eval / p=0); training-mode dropout
    # would use pltpu.prng_seed + pltpu.prng_random_bits for an in-kernel mask.
    o_ref[...] = y.astype(o_ref.dtype)


def _mlp_kernel_htiled(x_ref, w1_ref, b1_ref, w2_ref, b2_ref, o_ref, acc_ref, *,
                       approximate_gelu):
    """Streams H in tiles of `th`; f32 accumulator for the second matmul."""
    hstep = pl.program_id(1)

    @pl.when(hstep == 0)
    def _():
        acc_ref[...] = jnp.zeros_like(acc_ref)

    # c_fc column tile: (tm, D) @ (D, th) — complete hidden chunk, so GELU is valid
    h = jnp.dot(x_ref[...], w1_ref[...], preferred_element_type=jnp.float32)
    h = h + b1_ref[...].astype(jnp.float32)
    h = _gelu(h, approximate_gelu)
    # c_proj accumulation over the hidden (contraction) axis
    acc_ref[...] += jnp.dot(h.astype(w2_ref.dtype), w2_ref[...],
                            preferred_element_type=jnp.float32)

    @pl.when(hstep == pl.num_programs(1) - 1)
    def _():
        y = acc_ref[...] + b2_ref[...].astype(jnp.float32)
        # TODO(synk): dropout is identity here (eval / p=0).
        o_ref[...] = y.astype(o_ref.dtype)


# --------------------------------------------------------------------------- #
# Hardware / feature queries
# --------------------------------------------------------------------------- #

def _vmem_budget_bytes():
    """Usable scoped-VMEM cap with headroom for compiler scratch / semaphores."""
    try:
        cap = int(pltpu.get_tpu_info().vmem_capacity_bytes)
    except Exception:  # hardware query unavailable -> conservative (v7x-safe)
        cap = 64 * 2**20
    if cap >= 96 * 2**20:          # v5e / v6e: 128 MiB physical
        return 100 * 2**20
    return 52 * 2**20              # v7x: 64 MiB physical, leave ~12 MiB headroom


def _single_buffer_supported():
    """Feature-detect BlockSpec(pipeline_mode=pl.Buffered(1)) once at import."""
    if not hasattr(pl, "Buffered"):
        return False
    try:
        pl.BlockSpec((8, 128), lambda i: (0, 0), pipeline_mode=pl.Buffered(1))
    except TypeError:
        return False
    return True


_HAS_BUFFERED = _single_buffer_supported()


# --------------------------------------------------------------------------- #
# VMEM footprint estimates (bytes)
# --------------------------------------------------------------------------- #

def _resident_bytes(D, H, tm, x_it, w_it, single_buffer):
    wbuf = 1 if single_buffer else 2
    return int(
        2 * tm * D * x_it                              # x tiles (double-buffered)
        + 2 * tm * D * x_it                            # out tiles
        + wbuf * (D * H + H + H * D + D) * w_it        # resident weights/biases
        + tm * H * 4 + tm * D * 4)                     # f32 hidden + output work


def _htiled_bytes(D, H, tm, th, x_it, w_it):
    return int(
        2 * tm * D * x_it                              # x tiles
        + 2 * tm * D * x_it                            # out tiles
        + 2 * (D * th + th + th * D) * w_it            # streamed W1/b1/W2 tiles
        + 2 * D * w_it                                 # b2
        + tm * D * 4                                   # f32 accumulator scratch
        + tm * th * 4)                                 # f32 hidden chunk


# --------------------------------------------------------------------------- #
# pallas_call builders
# --------------------------------------------------------------------------- #

def _build_resident(M, D, H, tm, x_dtype, w_dtype, vmem_limit, approximate_gelu,
                    single_buffer):
    x_it = jnp.dtype(x_dtype).itemsize
    w_it = jnp.dtype(w_dtype).itemsize
    # Weights/biases have constant index maps — single-buffering them halves
    # their VMEM footprint (they are DMA'd once and stay resident).
    res_kwargs = (
        {"pipeline_mode": pl.Buffered(1)}
        if (single_buffer and _HAS_BUFFERED) else {}
    )
    cost = pl.CostEstimate(
        flops=4 * M * D * H,                       # two matmuls, 2*M*D*H each
        transcendentals=M * H,                     # erf/tanh on the hidden act
        bytes_accessed=2 * M * D * x_it + (D * H + H * D + H + D) * w_it,
    )
    kernel = functools.partial(_mlp_kernel_resident,
                               approximate_gelu=approximate_gelu)
    return pl.pallas_call(
        kernel,
        out_shape=jax.ShapeDtypeStruct((M, D), x_dtype),
        grid_spec=pltpu.PrefetchScalarGridSpec(
            num_scalar_prefetch=0,
            grid=(pl.cdiv(M, tm),),
            in_specs=[
                pl.BlockSpec((tm, D), lambda i: (i, 0)),               # x tile
                pl.BlockSpec((D, H), lambda i: (0, 0), **res_kwargs),  # W1
                pl.BlockSpec((1, H), lambda i: (0, 0), **res_kwargs),  # b1
                pl.BlockSpec((H, D), lambda i: (0, 0), **res_kwargs),  # W2
                pl.BlockSpec((1, D), lambda i: (0, 0), **res_kwargs),  # b2
            ],
            out_specs=pl.BlockSpec((tm, D), lambda i: (i, 0)),
        ),
        compiler_params=pltpu.CompilerParams(
            dimension_semantics=("parallel",),
            vmem_limit_bytes=vmem_limit),
        cost_estimate=cost,
    )


def _build_htiled(M, D, H, tm, th, x_dtype, w_dtype, vmem_limit,
                  approximate_gelu):
    x_it = jnp.dtype(x_dtype).itemsize
    w_it = jnp.dtype(w_dtype).itemsize
    num_m = pl.cdiv(M, tm)
    cost = pl.CostEstimate(
        flops=4 * M * D * H,
        transcendentals=M * H,
        bytes_accessed=(2 * M * D * x_it
                        + num_m * (D * H + H * D + H) * w_it + D * w_it),
    )
    kernel = functools.partial(_mlp_kernel_htiled,
                               approximate_gelu=approximate_gelu)
    return pl.pallas_call(
        kernel,
        out_shape=jax.ShapeDtypeStruct((M, D), x_dtype),
        grid_spec=pltpu.PrefetchScalarGridSpec(
            num_scalar_prefetch=0,
            grid=(num_m, H // th),
            in_specs=[
                pl.BlockSpec((tm, D), lambda i, h: (i, 0)),   # x (reused across h)
                pl.BlockSpec((D, th), lambda i, h: (0, h)),   # W1 column tile
                pl.BlockSpec((1, th), lambda i, h: (0, h)),   # b1 tile
                pl.BlockSpec((th, D), lambda i, h: (h, 0)),   # W2 row tile
                pl.BlockSpec((1, D), lambda i, h: (0, 0)),    # b2
            ],
            out_specs=pl.BlockSpec((tm, D), lambda i, h: (i, 0)),
            scratch_shapes=[pltpu.VMEM((tm, D), jnp.float32)],
        ),
        compiler_params=pltpu.CompilerParams(
            dimension_semantics=("parallel", "arbitrary"),
            vmem_limit_bytes=vmem_limit),
        cost_estimate=cost,
    )


# --------------------------------------------------------------------------- #
# Wrapper
# --------------------------------------------------------------------------- #

def mlp_pallas(x, w1, b1, w2, b2, *, tile_m=None, tile_h=None,
               approximate_gelu=False):
    """Fused MLP forward: GELU(x @ w1 + b1) @ w2 + b2  (dropout = identity).

    x: (M, D); w1: (D, H); b1: (H,); w2: (H, D); b2: (D,).
    """
    M, D = x.shape
    H = w1.shape[1]
    x_it = jnp.dtype(x.dtype).itemsize
    w_it = jnp.dtype(w1.dtype).itemsize

    budget = _vmem_budget_bytes()

    # Row tile: dtype-aware sublane rounding, MXU-friendly default, and at
    # least 2 grid steps so both v7x TensorCores get work on the parallel axis.
    sublane = max(8, 32 // x_it)        # 8 f32 / 16 bf16 / 32 int8-fp8
    tm = tile_m if tile_m is not None else (512 if budget >= 80 * 2**20 else 256)
    tm = min(tm, _round_up(M, sublane))
    tm = _round_up(tm, sublane)
    if pl.cdiv(M, tm) < 2 and M > sublane:
        tm = _round_up(pl.cdiv(M, 2), sublane)

    # Regime selection: resident weights when they fit the budget, otherwise
    # stream H tiles (th must divide H so no garbage hidden columns enter the
    # accumulation).
    margin = 1.2
    if tile_h is not None and tile_h < H:
        assert H % tile_h == 0, "tile_h must divide H"
        th = tile_h
    elif margin * _resident_bytes(D, H, tm, x_it, w_it, _HAS_BUFFERED) <= budget:
        th = None
    else:
        th = None
        for cand in (2048, 1024, 512, 256, 128):
            if H % cand == 0:
                th = cand
                if margin * _htiled_bytes(D, H, tm, cand, x_it, w_it) <= budget:
                    break
        # If no 128-multiple divides H (tiny/odd widths), fall back to resident.

    args = (x, w1, b1.reshape(1, H), w2, b2.reshape(1, D))

    if th is None:
        need = _resident_bytes(D, H, tm, x_it, w_it, _HAS_BUFFERED)
        vmem_limit = int(min(budget, max(2 * need, 32 * 2**20)))
        if _HAS_BUFFERED:
            try:
                return _build_resident(M, D, H, tm, x.dtype, w1.dtype, vmem_limit,
                                       approximate_gelu, single_buffer=True)(*args)
            except Exception as first_err:
                # Retry only attributes the failure to Buffered(1): if the
                # default-buffered build also fails, re-raise the original so
                # genuine bugs (shape errors, VMEM OOM) are never swallowed.
                try:
                    return _build_resident(M, D, H, tm, x.dtype, w1.dtype,
                                           vmem_limit, approximate_gelu,
                                           single_buffer=False)(*args)
                except Exception:
                    raise first_err
        return _build_resident(M, D, H, tm, x.dtype, w1.dtype, vmem_limit,
                               approximate_gelu, single_buffer=False)(*args)

    need = _htiled_bytes(D, H, tm, th, x_it, w_it)
    vmem_limit = int(min(budget, max(2 * need, 32 * 2**20)))
    return _build_htiled(M, D, H, tm, th, x.dtype, w1.dtype, vmem_limit,
                         approximate_gelu)(*args)


# --------------------------------------------------------------------------- #
# Reference + tests
# --------------------------------------------------------------------------- #

def mlp_reference(x, w1, b1, w2, b2):
    h = jnp.dot(x, w1, preferred_element_type=jnp.float32)
    h = h + b1.astype(jnp.float32)
    h = 0.5 * h * (1.0 + lax.erf(h * _INV_SQRT2))
    y = jnp.dot(h.astype(w2.dtype), w2, preferred_element_type=jnp.float32)
    y = y + b2.astype(jnp.float32)
    return y.astype(x.dtype)


def _run_case(key, M, D, **kwargs):
    H = 4 * D
    kx, k1, kb1, k2, kb2 = jax.random.split(key, 5)
    x = jax.random.normal(kx, (M, D), dtype=jnp.float32)
    w1 = jax.random.normal(k1, (D, H), dtype=jnp.float32) * 0.02
    b1 = jax.random.normal(kb1, (H,), dtype=jnp.float32) * 0.02
    w2 = jax.random.normal(k2, (H, D), dtype=jnp.float32) * 0.02
    b2 = jax.random.normal(kb2, (D,), dtype=jnp.float32) * 0.02

    out = jax.block_until_ready(mlp_pallas(x, w1, b1, w2, b2, **kwargs))
    ref = mlp_reference(x, w1, b1, w2, b2)
    assert out.shape == (M, D)
    # Tolerance allows for TPU default matmul precision (bf16 MXU passes with
    # f32 accumulation) possibly differing between the Mosaic kernel and the
    # XLA reference dot; real bugs are orders of magnitude larger.
    max_err = float(jnp.max(jnp.abs(out - ref)))
    assert jnp.allclose(out, ref, atol=1e-3, rtol=1e-2), max_err


if __name__ == "__main__":
    key = jax.random.PRNGKey(0)
    k0, k1, k2 = jax.random.split(key, 3)

    # Small GPT-ish config matching the module: batch=2, seq=8, n_embd=32.
    B, T, D = 2, 8, 32
    _run_case(k0, B * T, D)

    # Ragged row grid (no host-side pad/slice) with lane-dense D, resident weights.
    _run_case(k1, 300, 128, tile_m=256)

    # Force the H-tiled streaming path (v7x-style small-VMEM regime):
    # grid = (3 row tiles x 4 hidden tiles) with an f32 accumulator.
    _run_case(k2, 300, 128, tile_m=128, tile_h=128)

    print("KERNEL_OK")
</pallas_src>

<mosaic_0001>
module attributes {stable_mosaic.version = 11 : i64} {
  func.func @_mlp_kernel_resident(%arg0: i32, %arg1: memref<8x32xf32, #tpu.memory_space<vmem>>, %arg2: memref<32x128xf32, #tpu.memory_space<vmem>>, %arg3: memref<1x128xf32, #tpu.memory_space<vmem>>, %arg4: memref<128x32xf32, #tpu.memory_space<vmem>>, %arg5: memref<1x32xf32, #tpu.memory_space<vmem>>, %arg6: memref<8x32xf32, #tpu.memory_space<vmem>>) attributes {dimension_semantics = [#tpu.dimension_semantics<parallel>], iteration_bounds = array<i64: 2>, scalar_prefetch = 0 : i64, scratch_operands = 0 : i64, tpu.core_type = #tpu.core_type<tc>, window_params = [{transform_indices = @transform_0, window_bounds = array<i64: 8, 32>}, {pipeline_mode = #tpu.pipeline_mode<synchronous>, transform_indices = @transform_1, window_bounds = array<i64: 32, 128>}, {pipeline_mode = #tpu.pipeline_mode<synchronous>, transform_indices = @transform_2, window_bounds = array<i64: 1, 128>}, {pipeline_mode = #tpu.pipeline_mode<synchronous>, transform_indices = @transform_3, window_bounds = array<i64: 128, 32>}, {pipeline_mode = #tpu.pipeline_mode<synchronous>, transform_indices = @transform_4, window_bounds = array<i64: 1, 32>}, {transform_indices = @transform_5, window_bounds = array<i64: 8, 32>}]} {
    %c0 = arith.constant 0 : index
    %c0_0 = arith.constant 0 : index
    %0 = vector.load %arg1[%c0, %c0_0] : memref<8x32xf32, #tpu.memory_space<vmem>>, vector<8x32xf32>
    %c0_1 = arith.constant 0 : index
    %c0_2 = arith.constant 0 : index
    %1 = vector.load %arg2[%c0_1, %c0_2] : memref<32x128xf32, #tpu.memory_space<vmem>>, vector<32x128xf32>
    %cst = arith.constant dense<0.000000e+00> : vector<8x128xf32>
    %2 = tpu.matmul %0, %1, %cst {dimension_numbers = #tpu.dot_dimension_numbers<[1], [0], [0], [1], [0, 0, 1, 1], [], []>} : vector<8x32xf32>, vector<32x128xf32>, vector<8x128xf32> -> vector<8x128xf32>
    %c0_3 = arith.constant 0 : index
    %c0_4 = arith.constant 0 : index
    %3 = vector.load %arg3[%c0_3, %c0_4] : memref<1x128xf32, #tpu.memory_space<vmem>>, vector<1x128xf32>
    %4 = vector.broadcast %3 : vector<1x128xf32> to vector<8x128xf32>
    %5 = arith.addf %2, %4 : vector<8x128xf32>
    %cst_5 = arith.constant 5.000000e-01 : f32
    %6 = vector.broadcast %cst_5 : f32 to vector<8x128xf32>
    %7 = arith.mulf %6, %5 : vector<8x128xf32>
    %cst_6 = arith.constant 0.707106769 : f32
    %8 = vector.broadcast %cst_6 : f32 to vector<8x128xf32>
    %9 = arith.mulf %5, %8 : vector<8x128xf32>
    %10 = math.erf %9 : vector<8x128xf32>
    %cst_7 = arith.constant 1.000000e+00 : f32
    %11 = vector.broadcast %cst_7 : f32 to vector<8x128xf32>
    %12 = arith.addf %11, %10 : vector<8x128xf32>
    %13 = arith.mulf %7, %12 : vector<8x128xf32>
    %c0_8 = arith.constant 0 : index
    %c0_9 = arith.constant 0 : index
    %14 = vector.load %arg4[%c0_8, %c0_9] : memref<128x32xf32, #tpu.memory_space<vmem>>, vector<128x32xf32>
    %cst_10 = arith.constant dense<0.000000e+00> : vector<8x32xf32>
    %15 = tpu.matmul %13, %14, %cst_10 {dimension_numbers = #tpu.dot_dimension_numbers<[1], [0], [0], [1], [0, 0, 1, 1], [], []>} : vector<8x128xf32>, vector<128x32xf32>, vector<8x32xf32> -> vector<8x32xf32>
    %c0_11 = arith.constant 0 : index
    %c0_12 = arith.constant 0 : index
    %16 = vector.load %arg5[%c0_11, %c0_12] : memref<1x32xf32, #tpu.memory_space<vmem>>, vector<1x32xf32>
    %17 = vector.broadcast %16 : vector<1x32xf32> to vector<8x32xf32>
    %18 = arith.addf %15, %17 : vector<8x32xf32>
    %c0_13 = arith.constant 0 : index
    %c0_14 = arith.constant 0 : index
    %19 = vector.load %arg6[%c0_13, %c0_14] : memref<8x32xf32, #tpu.memory_space<vmem>>, vector<8x32xf32>
    tpu.vector_store %arg6[%c0_13, %c0_14], %18 {strides = array<i32>} : memref<8x32xf32, #tpu.memory_space<vmem>>, vector<8x32xf32>,
    return
  }
  func.func @transform_0(%arg0: i32) -> (i32, i32) {
    %c0_i32 = arith.constant 0 : i32
    %c0_i32_0 = arith.constant 0 : i32
    return %arg0, %c0_i32 : i32, i32
  }
  func.func @transform_1(%arg0: i32) -> (i32, i32) {
    %c0_i32 = arith.constant 0 : i32
    %c0_i32_0 = arith.constant 0 : i32
    %c0_i32_1 = arith.constant 0 : i32
    return %c0_i32, %c0_i32_0 : i32, i32
  }
  func.func @transform_2(%arg0: i32) -> (i32, i32) {
    %c0_i32 = arith.constant 0 : i32
    %c0_i32_0 = arith.constant 0 : i32
    %c0_i32_1 = arith.constant 0 : i32
    return %c0_i32, %c0_i32_0 : i32, i32
  }
  func.func @transform_3(%arg0: i32) -> (i32, i32) {
    %c0_i32 = arith.constant 0 : i32
    %c0_i32_0 = arith.constant 0 : i32
    %c0_i32_1 = arith.constant 0 : i32
    return %c0_i32, %c0_i32_0 : i32, i32
  }
  func.func @transform_4(%arg0: i32) -> (i32, i32) {
    %c0_i32 = arith.constant 0 : i32
    %c0_i32_0 = arith.constant 0 : i32
    %c0_i32_1 = arith.constant 0 : i32
    return %c0_i32, %c0_i32_0 : i32, i32
  }
  func.func @transform_5(%arg0: i32) -> (i32, i32) {
    %c0_i32 = arith.constant 0 : i32
    %c0_i32_0 = arith.constant 0 : i32
    return %arg0, %c0_i32 : i32, i32
  }
}

module attributes {stable_mosaic.version = 11 : i64} {
  func.func @_mlp_kernel_resident(%arg0: i32, %arg1: memref<8x32xf32, #tpu.memory_space<vmem>>, %arg2: memref<32x128xf32, #tpu.memory_space<vmem>>, %arg3: memref<1x128xf32, #tpu.memory_space<vmem>>, %arg4: memref<128x32xf32, #tpu.memory_space<vmem>>, %arg5: memref<1x32xf32, #tpu.memory_space<vmem>>, %arg6: memref<8x32xf32, #tpu.memory_space<vmem>>) attributes {dimension_semantics = [#tpu.dimension_semantics<parallel>], iteration_bounds = array<i64: 2>, scalar_prefetch = 0 : i64, scratch_operands = 0 : i64, tpu.core_type = #tpu.core_type<tc>, window_params = [{transform_indices = @transform_0, window_bounds = array<i64: 8, 32>}, {pipeline_mode = #tpu.pipeline_mode<synchronous>, transform_indices = @transform_1, window_bounds = array<i64: 32, 128>}, {pipeline_mode = #tpu.pipeline_mode<synchronous>, transform_indices = @transform_2, window_bounds = array<i64: 1, 128>}, {pipeline_mode = #tpu.pipeline_mode<synchronous>, transform_indices = @transform_3, window_bounds = array<i64: 128, 32>}, {pipeline_mode = #tpu.pipeline_mode<synchronous>, transform_indices = @transform_4, window_bounds = array<i64: 1, 32>}, {transform_indices = @transform_5, window_bounds = array<i64: 8, 32>}]} {
    %c0 = arith.constant 0 : index
    %c0_0 = arith.constant 0 : index
    %0 = vector.load %arg1[%c0, %c0_0] : memref<8x32xf32, #tpu.memory_space<vmem>>, vector<8x32xf32>
    %c0_1 = arith.constant 0 : index
    %c0_2 = arith.constant 0 : index
    %1 = vector.load %arg2[%c0_1, %c0_2] : memref<32x128xf32, #tpu.memory_space<vmem>>, vector<32x128xf32>
    %cst = arith.constant dense<0.000000e+00> : vector<8x128xf32>
    %2 = tpu.matmul %0, %1, %cst {dimension_numbers = #tpu.dot_dimension_numbers<[1], [0], [0], [1], [0, 0, 1, 1], [], []>} : vector<8x32xf32>, vector<32x128xf32>, vector<8x128xf32> -> vector<8x128xf32>
    %c0_3 = arith.constant 0 : index
    %c0_4 = arith.constant 0 : index
    %3 = vector.load %arg3[%c0_3, %c0_4] : memref<1x128xf32, #tpu.memory_space<vmem>>, vector<1x128xf32>
    %4 = vector.broadcast %3 : vector<1x128xf32> to vector<8x128xf32>
    %5 = arith.addf %2, %4 : vector<8x128xf32>
    %cst_5 = arith.constant 5.000000e-01 : f32
    %6 = vector.broadcast %cst_5 : f32 to vector<8x128xf32>
    %7 = arith.mulf %6, %5 : vector<8x128xf32>
    %cst_6 = arith.constant 0.707106769 : f32
    %8 = vector.broadcast %cst_6 : f32 to vector<8x128xf32>
    %9 = arith.mulf %5, %8 : vector<8x128xf32>
    %10 = math.erf %9 : vector<8x128xf32>
    %cst_7 = arith.constant 1.000000e+00 : f32
    %11 = vector.broadcast %cst_7 : f32 to vector<8x128xf32>
    %12 = arith.addf %11, %10 : vector<8x128xf32>
    %13 = arith.mulf %7, %12 : vector<8x128xf32>
    %c0_8 = arith.constant 0 : index
    %c0_9 = arith.constant 0 : index
    %14 = vector.load %arg4[%c0_8, %c0_9] : memref<128x32xf32, #tpu.memory_space<vmem>>, vector<128x32xf32>
    %cst_10 = arith.constant dense<0.000000e+00> : vector<8x32xf32>
    %15 = tpu.matmul %13, %14, %cst_10 {dimension_numbers = #tpu.dot_dimension_numbers<[1], [0], [0], [1], [0, 0, 1, 1], [], []>} : vector<8x128xf32>, vector<128x32xf32>, vector<8x32xf32> -> vector<8x32xf32>
    %c0_11 = arith.constant 0 : index
    %c0_12 = arith.constant 0 : index
    %16 = vector.load %arg5[%c0_11, %c0_12] : memref<1x32xf32, #tpu.memory_space<vmem>>, vector<1x32xf32>
    %17 = vector.broadcast %16 : vector<1x32xf32> to vector<8x32xf32>
    %18 = arith.addf %15, %17 : vector<8x32xf32>
    %c0_13 = arith.constant 0 : index
    %c0_14 = arith.constant 0 : index
    %19 = vector.load %arg6[%c0_13, %c0_14] : memref<8x32xf32, #tpu.memory_space<vmem>>, vector<8x32xf32>
    tpu.vector_store %arg6[%c0_13, %c0_14], %18 {strides = array<i32>} : memref<8x32xf32, #tpu.memory_space<vmem>>, vector<8x32xf32>,
    return
  }
  func.func @transform_0(%arg0: i32) -> (i32, i32) {
    %c0_i32 = arith.constant 0 : i32
    %c0_i32_0 = arith.constant 0 : i32
    return %arg0, %c0_i32 : i32, i32
  }
  func.func @transform_1(%arg0: i32) -> (i32, i32) {
    %c0_i32 = arith.constant 0 : i32
    %c0_i32_0 = arith.constant 0 : i32
    %c0_i32_1 = arith.constant 0 : i32
    return %c0_i32, %c0_i32_0 : i32, i32
  }
  func.func @transform_2(%arg0: i32) -> (i32, i32) {
    %c0_i32 = arith.constant 0 : i32
    %c0_i32_0 = arith.constant 0 : i32
    %c0_i32_1 = arith.constant 0 : i32
    return %c0_i32, %c0_i32_0 : i32, i32
  }
  func.func @transform_3(%arg0: i32) -> (i32, i32) {
    %c0_i32 = arith.constant 0 : i32
    %c0_i32_0 = arith.constant 0 : i32
    %c0_i32_1 = arith.constant 0 : i32
    return %c0_i32, %c0_i32_0 : i32, i32
  }
  func.func @transform_4(%arg0: i32) -> (i32, i32) {
    %c0_i32 = arith.constant 0 : i32
    %c0_i32_0 = arith.constant 0 : i32
    %c0_i32_1 = arith.constant 0 : i32
    return %c0_i32, %c0_i32_0 : i32, i32
  }
  func.func @transform_5(%arg0: i32) -> (i32, i32) {
    %c0_i32 = arith.constant 0 : i32
    %c0_i32_0 = arith.constant 0 : i32
    return %arg0, %c0_i32 : i32, i32
  }
}

</mosaic_0001>

<bundles_post_ra>
// kernel: tpu_custom_call.1
= control target key start
LH: loop header
LB: loop body
LE: loop exit
PB: predicated region body
PF: predicated region fallthrough
CT: control target
= control target key end

     0   :  { %10 = vsyncpa [#allocation3], 0  ;;  %s715_s0 = inlined_call_operand.vmem [shape: f32[16,32], index: 0, kind: input, shape index: {}]   ;;  %s716_s1 = inlined_call_operand.vmem [shape: f32[32,128], index: 1, kind: input, shape index: {}]   ;;  %s717_s2 = inlined_call_operand.vmem [shape: f32[1,128], index: 2, kind: input, shape index: {}]   ;;  %s718_s3 = inlined_call_operand.vmem [shape: f32[128,32], index: 3, kind: input, shape index: {}]   ;;  %s719_s4 = inlined_call_operand.vmem [shape: f32[1,32], index: 4, kind: input, shape index: {}]   ;;  %s720_s5 = inlined_call_operand.hbm [shape: f32[16,32], index: 5, kind: output, shape index: {}]  }
   0x1   :  { %12 = vsyncpa [#allocation3 + $0x1], 0  ;;  %s562_s18 = smov 0   ;;  %s564_s19 = smov 0  }
   0x2   :  { %s566_s20 = smov 0   ;;  %s568_s21 = smov 0  }
   0x3 LB: > { %s583_s22 = sadd.s32 4294967295, %s530_s21   ;;  %s413_s23 = sadd.s32 4294967294, %s530_s21   ;;  %s530_s21 = sphi %s568_s21, %s726_s21   ;;  %s526_s20 = sphi %s566_s20, %s725_s20   ;;  %s522_s19 = sphi %s564_s19, %s724_s19   ;;  %s518_s18 = sphi %s562_s18, %s723_s18  }
   0x4   : > { %s587_s24 = sadd.s32 1, %s530_s21   ;;  %s135_s25 = sadd.s32 1, %s526_s20 }
   0x5   : > { %s132_s26 = ssub.s32 %s530_s21, %s587_s24  ;;  %p145_p0 = scmp.ne.s32.totalorder %s526_s20, %s522_s19 }
   0x6   : > { %p133_p1 = scmp.eq.s32.totalorder %s132_s26, 0  ;;  %p146_p2 = scmp.eq.s32.totalorder %s583_s22, 1 }
   0x7   : > { %p151_p3 = scmp.ne.s32.totalorder %s522_s19, %s518_s18  ;;  %p152_p4 = scmp.eq.s32.totalorder %s413_s23, 1 }
   0x8   : > { %s598_s27 = scalar_select %p133_p1, %s526_s20, %s135_s25  }
   0x9   : > { %p600_p5 = por %p146_p2, %p145_p0  ;;  %p604_p6 = por %p152_p4, %p151_p3 }
   0xa   : > { %p416_p7 = scmp.ge.s32.totalorder %s530_s21, 1  ;;  %p189_p8 = scmp.lt.s32.totalorder %s530_s21, 3 }
   0xc   : > { %p190_p9 = pnand %p416_p7, %p189_p8 }
   0xd   : > { %p216_p10 = scmp.lt.s32.totalorder (!%p190_p9), %s583_s22, 1  ;;  %s213_s26 = sand.u32 (!%p190_p9), 1, %s522_s19  }
   0xe   : > { %193 = sbr.rel (%p190_p9) target bundleno = 337 (0x151), region = 40  ;;  %s417_s30 = sshll.u32 (!%p190_p9), %s213_s26, 3 }
   0xf   : > { %s422_s6 = sshll.u32 (!%p190_p9), %s583_s22, 3  ;;  %s215_s12 = scalar_lea.vmem (!%p190_p9), [#allocation2], %s417_s30 }
  0x10   : > { %s349_s9 = scalar_lea.hbm (!%p190_p9), %s720_s5, %s422_s6  ;;  %s351_s13 = sshll.u32 (!%p190_p9), %s215_s12, 4  ;;  %s352_s13 = int_to_ptr.vmem [resolvable:$true] %s351_s13 }
  0x11   : > { %s339_s15 = scalar_lea.sflag (!%p190_p9), [#allocation3], %s213_s26  ;;  %s488_s25 = scalar_lea.hbm (!%p190_p9), %s720_s5, 16 }
  0x13   : > { %v224_v0 = vld [vmem:[%s716_s1 + $0x18] sm:$0xff]  ;;  %v223_v1 = vld [vmem:[%s716_s1 + $0x10] sm:$0xff]  ;;  %v222_v2 = vld [vmem:[%s716_s1 + $0x8] sm:$0xff]  ;;  %s217_s11 = scalar_select %p216_p10, %s583_s22, 1  ;;  %vm229_vm0 = vcmask 261120  }
  0x14   : > { %245 = vmatpush.msra.mxu0 %v224_v0  ;;  %v221_v3 = vld [vmem:[%s716_s1] sm:$0xff]  ;;  %v312_v5 = vld [vmem:[%s718_s3 + $0x78] sm:$0xff]  ;;  %v311_v6 = vld [vmem:[%s718_s3 + $0x70] sm:$0xff] }
  0x15   : > { %s418_s14 = sshll.u32 %s217_s11, 3  ;;  %317 = vmatpush.msra.mxu1 %v312_v5  ;;  %v310_v7 = vld [vmem:[%s718_s3 + $0x68] sm:$0xff]  ;;  %v309_v8 = vld [vmem:[%s718_s3 + $0x60] sm:$0xff]  ;;  %v308_v10 = vld [vmem:[%s718_s3 + $0x58] sm:$0xff] }
  0x16   : > { %246 = vmatpush.msra.mxu0 %v223_v1  ;;  %s219_s17 = scalar_lea.vmem %s715_s0, %s418_s14  ;;  %v464_v9 = vld [vmem:[%s717_s2] ss:$0 sm:$0xff]  ;;  %v307_v11 = vld [vmem:[%s718_s3 + $0x50] sm:$0xff]  ;;  %v306_v13 = vld [vmem:[%s718_s3 + $0x48] sm:$0xff]  ;;  %s353_s14 = sshll.u32 %s349_s9, 4  ;;  %s354_s14 = int_to_ptr.hbm [resolvable:$true] %s353_s14 }
  0x17   : > { %v220_v4 = vld [vmem:[%s219_s17] sm:$0xff]  ;;  %318 = vmatpush.msra.mxu1 %v311_v6  ;;  %v304_v17 = vld [vmem:[%s718_s3 + $0x38] sm:$0xff]  ;;  %v303_v19 = vld [vmem:[%s718_s3 + $0x30] sm:$0xff]  ;;  %s482_s22 = sshra.s32 %s354_s14, 4  ;;  %s483_s22 = int_to_ptr.hbm [resolvable:$true] %s482_s22 }
  0x18   : > { %247 = vmatpush.msra.mxu0 %v222_v2  ;;  %v305_v15 = vld [vmem:[%s718_s3 + $0x40] sm:$0xff]  ;;  %v302_v21 = vld [vmem:[%s718_s3 + $0x28] sm:$0xff]  ;;  %v300_v27 = vld [vmem:[%s718_s3 + $0x18] sm:$0xff]  ;;  %s484_s16 = scalar_lea.hbm %s483_s22, 8  ;;  %p489_p0 = scmp.lt.s32.totalorder %s483_s22, %s720_s5 }
  0x19   : > { %319 = vmatpush.msra.mxu1 %v310_v7  ;;  %v301_v24 = vld [vmem:[%s718_s3 + $0x20] sm:$0xff]  ;;  %v299_v30 = vld [vmem:[%s718_s3 + $0x10] sm:$0xff]  ;;  %v298_v33 = vld [vmem:[%s718_s3 + $0x8] sm:$0xff]  ;;  %p485_p11 = scmp.ne.s32.totalorder %s483_s22, %s484_s16  ;;  %p490_p1 = scmp.lt.s32.totalorder %s488_s25, %s484_s16 }
  0x1a   : > { %248 = vmatpush.msra.mxu0 %v221_v3  ;;  %v297_v35 = vld [vmem:[%s718_s3] sm:$0xff] }
  0x1b   : > { %419 = vmatmul.msk.f32.vlgmr.msra.gmra.mxu0 %vm229_vm0, %v220_v4  ;;  %320 = vmatpush.msra.mxu1 %v309_v8  ;;  %v465_v63 = vld [vmem:[%s719_s4] ss:$0 sm:$0xff]  ;;  %p486_p12 = pnand %p485_p11, %p600_p5  ;;  %p491_p2 = por %p490_p1, %p489_p0 }
  0x1d   : > { %321 = vmatpush.msra.mxu1 %v308_v10  ;;  %p487_p13 = pneg %p486_p12 }
  0x1f   : > { %322 = vmatpush.msra.mxu1 %v307_v11  ;;  %p492_p3 = pnand %p491_p2, %p487_p13 }
  0x21   : > { %323 = vmatpush.msra.mxu1 %v306_v13 }
  0x23   : > { %324 = vmatpush.msra.mxu1 %v305_v15 }
  0x25   : > { %325 = vmatpush.msra.mxu1 %v304_v17 }
  0x27   : > { %326 = vmatpush.msra.mxu1 %v303_v19 }
  0x29   : > { %327 = vmatpush.msra.mxu1 %v302_v21 }
  0x2b   : > { %328 = vmatpush.msra.mxu1 %v301_v24 }
  0x2d   : > { %329 = vmatpush.msra.mxu1 %v300_v27 }
  0x2f   : > { %330 = vmatpush.msra.mxu1 %v299_v30 }
  0x31   : > { %331 = vmatpush.msra.mxu1 %v298_v33 }
  0x33   : > { %332 = vmatpush.msra.mxu1 %v297_v35 }
  0x98   : > { %v250_v12 = vpop.f32.mrf.mxu0 }
  0x99   : > { %v251_v14 = vadd.f32 %v464_v9, %v250_v12 }
  0x9b   : > { %v254_v16 = vmul.f32 0.70710677, %v251_v14  ;;  %v253_v60 = vmul.f32 0.5, %v251_v14 }
  0x9d   : > { %v255_v18 = vmul.f32 %v254_v16, %v254_v16 }
  0x9f   : > { %v256_v20 = vmin.f32 %v255_v18, 16.0 }
  0xa1   : > { %v257_v22 = vmul.f32 2.1237322e-06, %v256_v20  ;;  %v268_v23 = vmul.f32 3.8918573e-05, %v256_v20 }
  0xa3   : > { %v258_v25 = vadd.f32 0.00028619796, %v257_v22  ;;  %v269_v26 = vadd.f32 0.001143296, %v268_v23 }
  0xa5   : > { %v259_v28 = vmul.f32 %v258_v25, %v256_v20  ;;  %v270_v29 = vmul.f32 %v269_v26, %v256_v20 }
  0xa7   : > { %v271_v31 = vadd.f32 0.014752088, %v270_v29  ;;  %v260_v32 = vadd.f32 0.0036580483, %v259_v28 }
  0xa9   : > { %v272_v34 = vmul.f32 %v271_v31, %v256_v20  ;;  %v261_v37 = vmul.f32 %v260_v32, %v256_v20 }
  0xab   : > { %v273_v36 = vadd.f32 0.112945676, %v272_v34  ;;  %v262_v40 = vadd.f32 0.05243302, %v261_v37 }
  0xad   : > { %v274_v38 = vmul.f32 %v273_v36, %v256_v20  ;;  %v263_v43 = vmul.f32 %v262_v40, %v256_v20 }
  0xaf   : > { %v275_v39 = vadd.f32 0.4994258, %v274_v38  ;;  %v264_v44 = vadd.f32 0.18741608, %v263_v43 }
  0xb1   : > { %v276_v41 = vmul.f32 %v275_v39, %v256_v20  ;;  %v265_v46 = vmul.f32 %v264_v44, %v256_v20 }
  0xb3   : > { %v277_v42 = vadd.f32 1.0, %v276_v41  ;;  %v266_v50 = vadd.f32 1.1283791, %v265_v46 }
  0xb5   : > { %466 = vrcp.f32 %v277_v42  ;;  %v289_v49 = vand.u32 2147483648, %v277_v42  ;;  %v287_v52 = vand.u32 2147483647, %v277_v42  ;;  %vm283_vm2 = vweird.f32 %v277_v42 }
  0xb6   : > { %v267_v55 = vmul.f32 %v266_v50, %v254_v16 }
  0xb7   : > { %v290_v54 = vor.u32 1.1754944e-38, %v289_v49  ;;  %vm288_vm4 = vcmp.eq.f32.partialorder %v287_v52, 8.507059e+37 }
  0xbb   : > { %v467_v45 = vpop.eup %466 }
  0xbc   : > { %v279_v47 = vmul.f32 %v467_v45, %v277_v42  ;;  %vm284_vm1 = vweird.f32 %v467_v45 }
  0xbd   : > { %vm285_vm3 = vmor %vm283_vm2, %vm284_vm1 }
  0xbe   : > { %v280_v48 = vsub.f32 1.0, %v279_v47 }
  0xc0   : > { %v281_v51 = vmul.f32 %v467_v45, %v280_v48 }
  0xc2   : > { %v282_v53 = vadd.f32 %v467_v45, %v281_v51 }
  0xc4   : > { %v286_v56 = vsel %vm285_vm3, %v467_v45, %v282_v53 }
  0xc5   : > { %v291_v57 = vsel %vm288_vm4, %v290_v54, %v286_v56 }
  0xc6   : > { %v292_v58 = vmul.f32 %v291_v57, %v267_v55 }
  0xc8   : > { %v420_v59 = vclamps-f32 %v292_v58, 1.0 }
  0xca   : > { %v295_v61 = vadd.f32 1.0, %v420_v59 }
  0xcc   : > { %v296_v62 = vmul.f32 %v295_v61, %v253_v60 }
  0xce   : > { %333 = vmatmul.f32.vlgmr.msra.gmra.mxu1 %v296_v62 }
 0x14b   : > { %v334_v0 = vpop.f32.mrf.mxu1 }
 0x14c   : > { %v335_v1 = vadd.f32 %v465_v63, %v334_v0 }
 0x14e   : > { %337 = vst.msk [vmem:[%s215_s12] sm:$0xff] %vm229_vm0, %v335_v1 }
 0x14f   : > { %495 = shalt.err (!%p492_p3)
}
 0x150   : > { %425 = dma.vmem_to_hbm [thread:$0]  (%p600_p5), %s352_s13, 128, %s354_s14, %s339_s15  }
 0x151 PF: > { %p431_p4 = scmp.ge.s32.totalorder %s530_s21, 2  ;;  %s365_s26 = sand.u32 1, %s518_s18  }
 0x152   : > { %s366_s7 = scalar_lea.sflag [#allocation3], %s365_s26 }
 0x153   : > { %p428_p7 = pnand %p431_p4, %p604_p6 }
 0x155   : > { %p429_p8 = pneg %p428_p7 }
 0x157   : > { %513 = dma.done.wait (%p429_p8), %s366_s7, 128  }
 0x158   : > { %515 = vsyncadd (%p429_p8), %s366_s7, 4294967168  ;;  %p15_p9 = scmp.ge.s32.totalorder %s587_s24, 4   ;;  %s723_s18 = smov %s522_s19 }
 0x159   : > { %s724_s19 = smov %s526_s20  ;;  %s725_s20 = smov %s598_s27 }
 0x15a   : > { %s726_s21 = smov %s587_s24  ;;  %17 = sbr.rel (!%p15_p9) target bundleno = 3 (0x3), region = 75 }
 0x15f   :  { %372 = vsyncpa [#allocation3], 1 }
 0x160   :  { %374 = vsyncpa [#allocation3 + $0x1], 1 }

// kernel: tpu_custom_call.1
= control target key start
LH: loop header
LB: loop body
LE: loop exit
PB: predicated region body
PF: predicated region fallthrough
CT: control target
= control target key end

     0   :  { %10 = vsyncpa [#allocation3], 0  ;;  %s715_s0 = inlined_call_operand.vmem [shape: f32[16,32], index: 0, kind: input, shape index: {}]   ;;  %s716_s1 = inlined_call_operand.vmem [shape: f32[32,128], index: 1, kind: input, shape index: {}]   ;;  %s717_s2 = inlined_call_operand.vmem [shape: f32[1,128], index: 2, kind: input, shape index: {}]   ;;  %s718_s3 = inlined_call_operand.vmem [shape: f32[128,32], index: 3, kind: input, shape index: {}]   ;;  %s719_s4 = inlined_call_operand.vmem [shape: f32[1,32], index: 4, kind: input, shape index: {}]   ;;  %s720_s5 = inlined_call_operand.hbm [shape: f32[16,32], index: 5, kind: output, shape index: {}]  }
   0x1   :  { %12 = vsyncpa [#allocation3 + $0x1], 0  ;;  %s562_s18 = smov 0   ;;  %s564_s19 = smov 0  }
   0x2   :  { %s566_s20 = smov 0   ;;  %s568_s21 = smov 0  }
   0x3 LB: > { %s583_s22 = sadd.s32 4294967295, %s530_s21   ;;  %s413_s23 = sadd.s32 4294967294, %s530_s21   ;;  %s530_s21 = sphi %s568_s21, %s726_s21   ;;  %s526_s20 = sphi %s566_s20, %s725_s20   ;;  %s522_s19 = sphi %s564_s19, %s724_s19   ;;  %s518_s18 = sphi %s562_s18, %s723_s18  }
   0x4   : > { %s587_s24 = sadd.s32 1, %s530_s21   ;;  %s135_s25 = sadd.s32 1, %s526_s20 }
   0x5   : > { %s132_s26 = ssub.s32 %s530_s21, %s587_s24  ;;  %p145_p0 = scmp.ne.s32.totalorder %s526_s20, %s522_s19 }
   0x6   : > { %p133_p1 = scmp.eq.s32.totalorder %s132_s26, 0  ;;  %p146_p2 = scmp.eq.s32.totalorder %s583_s22, 1 }
   0x7   : > { %p151_p3 = scmp.ne.s32.totalorder %s522_s19, %s518_s18  ;;  %p152_p4 = scmp.eq.s32.totalorder %s413_s23, 1 }
   0x8   : > { %s598_s27 = scalar_select %p133_p1, %s526_s20, %s135_s25  }
   0x9   : > { %p600_p5 = por %p146_p2, %p145_p0  ;;  %p604_p6 = por %p152_p4, %p151_p3 }
   0xa   : > { %p416_p7 = scmp.ge.s32.totalorder %s530_s21, 1  ;;  %p189_p8 = scmp.lt.s32.totalorder %s530_s21, 3 }
   0xc   : > { %p190_p9 = pnand %p416_p7, %p189_p8 }
   0xd   : > { %p216_p10 = scmp.lt.s32.totalorder (!%p190_p9), %s583_s22, 1  ;;  %s213_s26 = sand.u32 (!%p190_p9), 1, %s522_s19  }
   0xe   : > { %193 = sbr.rel (%p190_p9) target bundleno = 337 (0x151), region = 40  ;;  %s417_s30 = sshll.u32 (!%p190_p9), %s213_s26, 3 }
   0xf   : > { %s422_s6 = sshll.u32 (!%p190_p9), %s583_s22, 3  ;;  %s215_s12 = scalar_lea.vmem (!%p190_p9), [#allocation2], %s417_s30 }
  0x10   : > { %s349_s9 = scalar_lea.hbm (!%p190_p9), %s720_s5, %s422_s6  ;;  %s351_s13 = sshll.u32 (!%p190_p9), %s215_s12, 4  ;;  %s352_s13 = int_to_ptr.vmem [resolvable:$true] %s351_s13 }
  0x11   : > { %s339_s15 = scalar_lea.sflag (!%p190_p9), [#allocation3], %s213_s26  ;;  %s488_s25 = scalar_lea.hbm (!%p190_p9), %s720_s5, 16 }
  0x13   : > { %v224_v0 = vld [vmem:[%s716_s1 + $0x18] sm:$0xff]  ;;  %v223_v1 = vld [vmem:[%s716_s1 + $0x10] sm:$0xff]  ;;  %v222_v2 = vld [vmem:[%s716_s1 + $0x8] sm:$0xff]  ;;  %s217_s11 = scalar_select %p216_p10, %s583_s22, 1  ;;  %vm229_vm0 = vcmask 261120  }
  0x14   : > { %245 = vmatpush.msra.mxu0 %v224_v0  ;;  %v221_v3 = vld [vmem:[%s716_s1] sm:$0xff]  ;;  %v312_v5 = vld [vmem:[%s718_s3 + $0x78] sm:$0xff]  ;;  %v311_v6 = vld [vmem:[%s718_s3 + $0x70] sm:$0xff] }
  0x15   : > { %s418_s14 = sshll.u32 %s217_s11, 3  ;;  %317 = vmatpush.msra.mxu1 %v312_v5  ;;  %v310_v7 = vld [vmem:[%s718_s3 + $0x68] sm:$0xff]  ;;  %v309_v8 = vld [vmem:[%s718_s3 + $0x60] sm:$0xff]  ;;  %v308_v10 = vld [vmem:[%s718_s3 + $0x58] sm:$0xff] }
  0x16   : > { %246 = vmatpush.msra.mxu0 %v223_v1  ;;  %s219_s17 = scalar_lea.vmem %s715_s0, %s418_s14  ;;  %v464_v9 = vld [vmem:[%s717_s2] ss:$0 sm:$0xff]  ;;  %v307_v11 = vld [vmem:[%s718_s3 + $0x50] sm:$0xff]  ;;  %v306_v13 = vld [vmem:[%s718_s3 + $0x48] sm:$0xff]  ;;  %s353_s14 = sshll.u32 %s349_s9, 4  ;;  %s354_s14 = int_to_ptr.hbm [resolvable:$true] %s353_s14 }
  0x17   : > { %v220_v4 = vld [vmem:[%s219_s17] sm:$0xff]  ;;  %318 = vmatpush.msra.mxu1 %v311_v6  ;;  %v304_v17 = vld [vmem:[%s718_s3 + $0x38] sm:$0xff]  ;;  %v303_v19 = vld [vmem:[%s718_s3 + $0x30] sm:$0xff]  ;;  %s482_s22 = sshra.s32 %s354_s14, 4  ;;  %s483_s22 = int_to_ptr.hbm [resolvable:$true] %s482_s22 }
  0x18   : > { %247 = vmatpush.msra.mxu0 %v222_v2  ;;  %v305_v15 = vld [vmem:[%s718_s3 + $0x40] sm:$0xff]  ;;  %v302_v21 = vld [vmem:[%s718_s3 + $0x28] sm:$0xff]  ;;  %v300_v27 = vld [vmem:[%s718_s3 + $0x18] sm:$0xff]  ;;  %s484_s16 = scalar_lea.hbm %s483_s22, 8  ;;  %p489_p0 = scmp.lt.s32.totalorder %s483_s22, %s720_s5 }
  0x19   : > { %319 = vmatpush.msra.mxu1 %v310_v7  ;;  %v301_v24 = vld [vmem:[%s718_s3 + $0x20] sm:$0xff]  ;;  %v299_v30 = vld [vmem:[%s718_s3 + $0x10] sm:$0xff]  ;;  %v298_v33 = vld [vmem:[%s718_s3 + $0x8] sm:$0xff]  ;;  %p485_p11 = scmp.ne.s32.totalorder %s483_s22, %s484_s16  ;;  %p490_p1 = scmp.lt.s32.totalorder %s488_s25, %s484_s16 }
  0x1a   : > { %248 = vmatpush.msra.mxu0 %v221_v3  ;;  %v297_v35 = vld [vmem:[%s718_s3] sm:$0xff] }
  0x1b   : > { %419 = vmatmul.msk.f32.vlgmr.msra.gmra.mxu0 %vm229_vm0, %v220_v4  ;;  %320 = vmatpush.msra.mxu1 %v309_v8  ;;  %v465_v63 = vld [vmem:[%s719_s4] ss:$0 sm:$0xff]  ;;  %p486_p12 = pnand %p485_p11, %p600_p5  ;;  %p491_p2 = por %p490_p1, %p489_p0 }
  0x1d   : > { %321 = vmatpush.msra.mxu1 %v308_v10  ;;  %p487_p13 = pneg %p486_p12 }
  0x1f   : > { %322 = vmatpush.msra.mxu1 %v307_v11  ;;  %p492_p3 = pnand %p491_p2, %p487_p13 }
  0x21   : > { %323 = vmatpush.msra.mxu1 %v306_v13 }
  0x23   : > { %324 = vmatpush.msra.mxu1 %v305_v15 }
  0x25   : > { %325 = vmatpush.msra.mxu1 %v304_v17 }
  0x27   : > { %326 = vmatpush.msra.mxu1 %v303_v19 }
  0x29   : > { %327 = vmatpush.msra.mxu1 %v302_v21 }
  0x2b   : > { %328 = vmatpush.msra.mxu1 %v301_v24 }
  0x2d   : > { %329 = vmatpush.msra.mxu1 %v300_v27 }
  0x2f   : > { %330 = vmatpush.msra.mxu1 %v299_v30 }
  0x31   : > { %331 = vmatpush.msra.mxu1 %v298_v33 }
  0x33   : > { %332 = vmatpush.msra.mxu1 %v297_v35 }
  0x98   : > { %v250_v12 = vpop.f32.mrf.mxu0 }
  0x99   : > { %v251_v14 = vadd.f32 %v464_v9, %v250_v12 }
  0x9b   : > { %v254_v16 = vmul.f32 0.70710677, %v251_v14  ;;  %v253_v60 = vmul.f32 0.5, %v251_v14 }
  0x9d   : > { %v255_v18 = vmul.f32 %v254_v16, %v254_v16 }
  0x9f   : > { %v256_v20 = vmin.f32 %v255_v18, 16.0 }
  0xa1   : > { %v257_v22 = vmul.f32 2.1237322e-06, %v256_v20  ;;  %v268_v23 = vmul.f32 3.8918573e-05, %v256_v20 }
  0xa3   : > { %v258_v25 = vadd.f32 0.00028619796, %v257_v22  ;;  %v269_v26 = vadd.f32 0.001143296, %v268_v23 }
  0xa5   : > { %v259_v28 = vmul.f32 %v258_v25, %v256_v20  ;;  %v270_v29 = vmul.f32 %v269_v26, %v256_v20 }
  0xa7   : > { %v271_v31 = vadd.f32 0.014752088, %v270_v29  ;;  %v260_v32 = vadd.f32 0.0036580483, %v259_v28 }
  0xa9   : > { %v272_v34 = vmul.f32 %v271_v31, %v256_v20  ;;  %v261_v37 = vmul.f32 %v260_v32, %v256_v20 }
  0xab   : > { %v273_v36 = vadd.f32 0.112945676, %v272_v34  ;;  %v262_v40 = vadd.f32 0.05243302, %v261_v37 }
  0xad   : > { %v274_v38 = vmul.f32 %v273_v36, %v256_v20  ;;  %v263_v43 = vmul.f32 %v262_v40, %v256_v20 }
  0xaf   : > { %v275_v39 = vadd.f32 0.4994258, %v274_v38  ;;  %v264_v44 = vadd.f32 0.18741608, %v263_v43 }
  0xb1   : > { %v276_v41 = vmul.f32 %v275_v39, %v256_v20  ;;  %v265_v46 = vmul.f32 %v264_v44, %v256_v20 }
  0xb3   : > { %v277_v42 = vadd.f32 1.0, %v276_v41  ;;  %v266_v50 = vadd.f32 1.1283791, %v265_v46 }
  0xb5   : > { %466 = vrcp.f32 %v277_v42  ;;  %v289_v49 = vand.u32 2147483648, %v277_v42  ;;  %v287_v52 = vand.u32 2147483647, %v277_v42  ;;  %vm283_vm2 = vweird.f32 %v277_v42 }
  0xb6   : > { %v267_v55 = vmul.f32 %v266_v50, %v254_v16 }
  0xb7   : > { %v290_v54 = vor.u32 1.1754944e-38, %v289_v49  ;;  %vm288_vm4 = vcmp.eq.f32.partialorder %v287_v52, 8.507059e+37 }
  0xbb   : > { %v467_v45 = vpop.eup %466 }
  0xbc   : > { %v279_v47 = vmul.f32 %v467_v45, %v277_v42  ;;  %vm284_vm1 = vweird.f32 %v467_v45 }
  0xbd   : > { %vm285_vm3 = vmor %vm283_vm2, %vm284_vm1 }
  0xbe   : > { %v280_v48 = vsub.f32 1.0, %v279_v47 }
  0xc0   : > { %v281_v51 = vmul.f32 %v467_v45, %v280_v48 }
  0xc2   : > { %v282_v53 = vadd.f32 %v467_v45, %v281_v51 }
  0xc4   : > { %v286_v56 = vsel %vm285_vm3, %v467_v45, %v282_v53 }
  0xc5   : > { %v291_v57 = vsel %vm288_vm4, %v290_v54, %v286_v56 }
  0xc6   : > { %v292_v58 = vmul.f32 %v291_v57, %v267_v55 }
  0xc8   : > { %v420_v59 = vclamps-f32 %v292_v58, 1.0 }
  0xca   : > { %v295_v61 = vadd.f32 1.0, %v420_v59 }
  0xcc   : > { %v296_v62 = vmul.f32 %v295_v61, %v253_v60 }
  0xce   : > { %333 = vmatmul.f32.vlgmr.msra.gmra.mxu1 %v296_v62 }
 0x14b   : > { %v334_v0 = vpop.f32.mrf.mxu1 }
 0x14c   : > { %v335_v1 = vadd.f32 %v465_v63, %v334_v0 }
 0x14e   : > { %337 = vst.msk [vmem:[%s215_s12] sm:$0xff] %vm229_vm0, %v335_v1 }
 0x14f   : > { %495 = shalt.err (!%p492_p3)
}
 0x150   : > { %425 = dma.vmem_to_hbm [thread:$0]  (%p600_p5), %s352_s13, 128, %s354_s14, %s339_s15  }
 0x151 PF: > { %p431_p4 = scmp.ge.s32.totalorder %s530_s21, 2  ;;  %s365_s26 = sand.u32 1, %s518_s18  }
 0x152   : > { %s366_s7 = scalar_lea.sflag [#allocation3], %s365_s26 }
 0x153   : > { %p428_p7 = pnand %p431_p4, %p604_p6 }
 0x155   : > { %p429_p8 = pneg %p428_p7 }
 0x157   : > { %513 = dma.done.wait (%p429_p8), %s366_s7, 128  }
 0x158   : > { %515 = vsyncadd (%p429_p8), %s366_s7, 4294967168  ;;  %p15_p9 = scmp.ge.s32.totalorder %s587_s24, 4   ;;  %s723_s18 = smov %s522_s19 }
 0x159   : > { %s724_s19 = smov %s526_s20  ;;  %s725_s20 = smov %s598_s27 }
 0x15a   : > { %s726_s21 = smov %s587_s24  ;;  %17 = sbr.rel (!%p15_p9) target bundleno = 3 (0x3), region = 75 }
 0x15f   :  { %372 = vsyncpa [#allocation3], 1 }
 0x160   :  { %374 = vsyncpa [#allocation3 + $0x1], 1 }

</bundles_post_ra>
